<compile_context>
chip_gen: v7x
topology: tpu7x:2x2x1
jax: 0.10.0
libtpu: 0.0.40
codegen_flags: <defaults>
</compile_context>

<pallas_src>
import functools

import jax
import jax.numpy as jnp
from jax.experimental import pallas as pl
from jax.experimental.pallas import tpu as pltpu

_MIB = 1024 * 1024
# Conservative count of live full-tile f32 intermediates inside the kernel
# (s, t, shifted copies, exp, product) used for the VMEM budget.
_F32_TEMPS = 5


def _soft_target_kernel(s_ref, t_ref, rowkl_ref, *, inv_t: float):
    """One (TB, C) tile: per-row KL(softmax(t/T) || softmax(s/T))."""
    # Load student/teacher logits; all math in f32 (v5e has no bf16 VPU/EUP).
    s = s_ref[...].astype(jnp.float32) * inv_t
    t = t_ref[...].astype(jnp.float32) * inv_t

    # Student: only the row-scalar logsumexp is needed.
    s_max = jnp.max(s, axis=-1, keepdims=True)
    s_shift = s - s_max
    s_lse = jnp.log(jnp.sum(jnp.exp(s_shift), axis=-1, keepdims=True))

    # Teacher softmax pieces (max-shifted).
    t_max = jnp.max(t, axis=-1, keepdims=True)
    t_shift = t - t_max
    t_exp = jnp.exp(t_shift)
    t_sum = jnp.sum(t_exp, axis=-1, keepdims=True)

    # Algebraic form: single full-tile product, row-scalar corrections kept
    # outside the full-tile expression.  (t_exp underflow already gives 0, so
    # no where-guard is needed.)
    num = jnp.sum(t_exp * (t_shift - s_shift), axis=-1, keepdims=True)
    rowkl_ref[...] = (num * pl.reciprocal(t_sum, approx=False)
                      - jnp.log(t_sum) + s_lse)


def _vmem_capacity_bytes() -> int:
    """Per-TensorCore VMEM capacity; conservative (64 MiB) if unknown."""
    try:
        cap = getattr(pltpu.get_tpu_info(), "vmem_capacity_bytes", None)
        if cap:
            return int(cap)
    except Exception:
        pass
    try:
        kind = jax.devices()[0].device_kind.lower()
        if any(tag in kind for tag in ("v4", "v5", "v6")):
            return 128 * _MIB
    except Exception:
        pass
    return 64 * _MIB  # v7x-sized VMEM (conservative default)


def _choose_block_b(B: int, C: int, in_itemsize: int, row_align: int,
                    vmem_budget: int, target_tile_bytes: int) -> int:
    """Pick a batch tile: large (multi-MiB) but within the VMEM budget."""
    # Per-row VMEM cost: 2 inputs x 2 pipeline buffers + f32 full-tile temps.
    per_row_bytes = C * (4 * in_itemsize + 4 * _F32_TEMPS)
    rows_budget = vmem_budget // per_row_bytes
    rows_target = target_tile_bytes // (C * in_itemsize)
    tb = max(row_align, min(rows_budget, rows_target))
    tb = max(row_align, (tb // row_align) * row_align)
    # Ensure >= 2 grid steps for non-trivial B so the "parallel" axis can
    # shard across both v7x TensorCores (neutral on v5e/v6e).
    if B >= 2 * row_align:
        half = max(row_align, (((B + 1) // 2) // row_align) * row_align)
        tb = min(tb, half)
    return max(1, min(tb, B))


def soft_target_loss(out_s: jax.Array, out_t: jax.Array, T: float = 2.0,
                     block_b: int | None = None) -> jax.Array:
    """KD soft-target loss. out_s, out_t: [B, C] logits (f32 or bf16). Scalar f32.

    Tip: pass bf16 logits when possible -- the kernel is HBM-bound and upcasts
    to f32 internally, so bf16 inputs are ~2x faster end-to-end (esp. v5e).
    """
    assert out_s.shape == out_t.shape and out_s.ndim == 2
    B, C = out_s.shape
    in_itemsize = max(jnp.dtype(out_s.dtype).itemsize,
                      jnp.dtype(out_t.dtype).itemsize)
    # bf16 packs 16 rows per vreg sublane group -> align blocks accordingly.
    row_align = 8 if in_itemsize >= 4 else (16 if in_itemsize == 2 else 32)

    # Generation-aware VMEM budget / tile targets.
    vmem_cap = _vmem_capacity_bytes()
    if vmem_cap >= 128 * _MIB:              # v5e / v6e (128 MiB physical)
        vmem_budget = 96 * _MIB
        hard_cap = 112 * _MIB
        target_tile = 8 * _MIB
    else:                                   # v7x (64 MiB physical per TC)
        vmem_budget = min(44 * _MIB, int(vmem_cap * 0.7))
        hard_cap = max(vmem_budget, min(48 * _MIB, vmem_cap - 8 * _MIB))
        target_tile = 5 * _MIB

    if block_b is None:
        block_b = _choose_block_b(B, C, in_itemsize, row_align,
                                  vmem_budget, target_tile)
    block_b = min(int(block_b), B)
    if block_b < B:
        block_b = max(row_align, (block_b // row_align) * row_align)

    grid = (pl.cdiv(B, block_b),)

    # VMEM: 2 inputs x 2 pipeline buffers + f32 full-tile temps + tiny output.
    tile_in_bytes = block_b * C * in_itemsize
    needed = 4 * tile_in_bytes + _F32_TEMPS * block_b * C * 4 + 4 * block_b * 4
    vmem_limit = int(min(hard_cap, max(16 * _MIB, needed + needed // 4)))

    cost = pl.CostEstimate(
        flops=int(10 * B * C),
        transcendentals=int(2 * B * C + 4 * B),
        bytes_accessed=int(2 * B * C * in_itemsize + B * 4),
    )

    kernel = functools.partial(_soft_target_kernel, inv_t=float(1.0 / T))

    row_kl = pl.pallas_call(
        kernel,
        out_shape=jax.ShapeDtypeStruct((B, 1), jnp.float32),
        grid=grid,
        in_specs=[
            pl.BlockSpec((block_b, C), lambda i: (i, 0)),
            pl.BlockSpec((block_b, C), lambda i: (i, 0)),
        ],
        out_specs=pl.BlockSpec((block_b, 1), lambda i: (i, 0)),
        compiler_params=pltpu.CompilerParams(
            dimension_semantics=("parallel",),
            vmem_limit_bytes=vmem_limit,
        ),
        cost_estimate=cost,
    )(out_s, out_t)

    # batchmean + T^2 scaling; tiny reduction left to XLA outside the kernel.
    return jnp.sum(row_kl) * (float(T) * float(T) / B)


if __name__ == "__main__":
    key = jax.random.PRNGKey(0)
    T = 2.0

    def ref_loss(s, t, temp):
        s32 = s.astype(jnp.float32)
        t32 = t.astype(jnp.float32)
        log_p_s = jax.nn.log_softmax(s32 / temp, axis=1)
        p_t = jax.nn.softmax(t32 / temp, axis=1)
        return jnp.sum(p_t * (jnp.log(p_t) - log_p_s)) / s.shape[0] * temp * temp

    jit_loss = jax.jit(soft_target_loss, static_argnames=("T", "block_b"))

    k1, k2, k3, k4 = jax.random.split(key, 4)

    # Case 1: small f32 logits, single tile (B=8, C=32), auto block_b.
    B, C = 8, 32
    out_s = jax.random.normal(k1, (B, C), dtype=jnp.float32)
    out_t = jax.random.normal(k2, (B, C), dtype=jnp.float32)
    loss = jit_loss(out_s, out_t, T=T)
    jax.block_until_ready(loss)
    ref = ref_loss(out_s, out_t, T)
    assert jnp.allclose(loss, ref, rtol=2e-5, atol=2e-5), (loss, ref)

    # Case 2: multi-tile grid with a ragged last tile (B=50, block_b=16).
    B2, C2 = 50, 32
    s2 = jax.random.normal(k3, (B2, C2), dtype=jnp.float32)
    t2 = jax.random.normal(k4, (B2, C2), dtype=jnp.float32)
    loss2 = jit_loss(s2, t2, T=T, block_b=16)
    jax.block_until_ready(loss2)
    ref2 = ref_loss(s2, t2, T)
    assert jnp.allclose(loss2, ref2, rtol=2e-5, atol=2e-5), (loss2, ref2)

    # Case 3: bf16 logits from HBM (no host upcast); f32 math in-kernel.
    kb1, kb2 = jax.random.split(k1)
    B3, C3 = 64, 128
    s3 = jax.random.normal(kb1, (B3, C3), dtype=jnp.float32).astype(jnp.bfloat16)
    t3 = jax.random.normal(kb2, (B3, C3), dtype=jnp.float32).astype(jnp.bfloat16)
    loss3 = jit_loss(s3, t3, T=T, block_b=16)
    jax.block_until_ready(loss3)
    ref3 = ref_loss(s3, t3, T)
    assert jnp.allclose(loss3, ref3, rtol=1e-4, atol=1e-4), (loss3, ref3)

    # Case 4: auto block_b exercises the ">=2 grid steps" split path.
    kc1, kc2 = jax.random.split(k2)
    B4, C4 = 128, 256
    s4 = jax.random.normal(kc1, (B4, C4), dtype=jnp.float32)
    t4 = jax.random.normal(kc2, (B4, C4), dtype=jnp.float32)
    loss4 = jit_loss(s4, t4, T=T)
    jax.block_until_ready(loss4)
    ref4 = ref_loss(s4, t4, T)
    assert jnp.allclose(loss4, ref4, rtol=2e-5, atol=2e-5), (loss4, ref4)

    print("KERNEL_OK")
</pallas_src>

<mosaic_0001>
module attributes {stable_mosaic.version = 11 : i64} {
  func.func @_soft_target_kernel(%arg0: i32, %arg1: memref<8x32xf32, #tpu.memory_space<vmem>>, %arg2: memref<8x32xf32, #tpu.memory_space<vmem>>, %arg3: memref<8x1xf32, #tpu.memory_space<vmem>>) attributes {dimension_semantics = [#tpu.dimension_semantics<parallel>], iteration_bounds = array<i64: 1>, scalar_prefetch = 0 : i64, scratch_operands = 0 : i64, tpu.core_type = #tpu.core_type<tc>, window_params = [{transform_indices = @transform_0, window_bounds = array<i64: 8, 32>}, {transform_indices = @transform_1, window_bounds = array<i64: 8, 32>}, {transform_indices = @transform_2, window_bounds = array<i64: 8, 1>}]} {
    %c0 = arith.constant 0 : index
    %c0_0 = arith.constant 0 : index
    %0 = vector.load %arg1[%c0, %c0_0] : memref<8x32xf32, #tpu.memory_space<vmem>>, vector<8x32xf32>
    %cst = arith.constant 5.000000e-01 : f32
    %1 = vector.broadcast %cst : f32 to vector<8x32xf32>
    %2 = arith.mulf %0, %1 : vector<8x32xf32>
    %c0_1 = arith.constant 0 : index
    %c0_2 = arith.constant 0 : index
    %3 = vector.load %arg2[%c0_1, %c0_2] : memref<8x32xf32, #tpu.memory_space<vmem>>, vector<8x32xf32>
    %cst_3 = arith.constant 5.000000e-01 : f32
    %4 = vector.broadcast %cst_3 : f32 to vector<8x32xf32>
    %5 = arith.mulf %3, %4 : vector<8x32xf32>
    %cst_4 = arith.constant dense<0xFF800000> : vector<8xf32>
    %6 = vector.multi_reduction <maximumf>, %2, %cst_4 [1] : vector<8x32xf32> to vector<8xf32>
    %7 = vector.shape_cast %6 : vector<8xf32> to vector<8x1xf32>
    %8 = vector.broadcast %7 : vector<8x1xf32> to vector<8x32xf32>
    %9 = arith.subf %2, %8 : vector<8x32xf32>
    %10 = math.exp %9 : vector<8x32xf32>
    %cst_5 = arith.constant dense<0.000000e+00> : vector<8xf32>
    %11 = vector.multi_reduction <add>, %10, %cst_5 [1] : vector<8x32xf32> to vector<8xf32>
    %12 = vector.shape_cast %11 : vector<8xf32> to vector<8x1xf32>
    %13 = math.log %12 : vector<8x1xf32>
    %cst_6 = arith.constant dense<0xFF800000> : vector<8xf32>
    %14 = vector.multi_reduction <maximumf>, %5, %cst_6 [1] : vector<8x32xf32> to vector<8xf32>
    %15 = vector.shape_cast %14 : vector<8xf32> to vector<8x1xf32>
    %16 = vector.broadcast %15 : vector<8x1xf32> to vector<8x32xf32>
    %17 = arith.subf %5, %16 : vector<8x32xf32>
    %18 = math.exp %17 : vector<8x32xf32>
    %cst_7 = arith.constant dense<0.000000e+00> : vector<8xf32>
    %19 = vector.multi_reduction <add>, %18, %cst_7 [1] : vector<8x32xf32> to vector<8xf32>
    %20 = vector.shape_cast %19 : vector<8xf32> to vector<8x1xf32>
    %21 = arith.subf %17, %9 : vector<8x32xf32>
    %22 = arith.mulf %18, %21 : vector<8x32xf32>
    %cst_8 = arith.constant dense<0.000000e+00> : vector<8xf32>
    %23 = vector.multi_reduction <add>, %22, %cst_8 [1] : vector<8x32xf32> to vector<8xf32>
    %24 = vector.shape_cast %23 : vector<8xf32> to vector<8x1xf32>
    %25 = tpu.reciprocal %20 : vector<8x1xf32> -> vector<8x1xf32>
    %26 = arith.mulf %24, %25 : vector<8x1xf32>
    %27 = math.log %20 : vector<8x1xf32>
    %28 = arith.subf %26, %27 : vector<8x1xf32>
    %29 = arith.addf %28, %13 : vector<8x1xf32>
    %c0_9 = arith.constant 0 : index
    %c0_10 = arith.constant 0 : index
    %30 = vector.load %arg3[%c0_9, %c0_10] : memref<8x1xf32, #tpu.memory_space<vmem>>, vector<8x1xf32>
    tpu.vector_store %arg3[%c0_9, %c0_10], %29 {strides = array<i32>} : memref<8x1xf32, #tpu.memory_space<vmem>>, vector<8x1xf32>,
    return
  }
  func.func @transform_0(%arg0: i32) -> (i32, i32) {
    %c0_i32 = arith.constant 0 : i32
    %c0_i32_0 = arith.constant 0 : i32
    return %arg0, %c0_i32 : i32, i32
  }
  func.func @transform_1(%arg0: i32) -> (i32, i32) {
    %c0_i32 = arith.constant 0 : i32
    %c0_i32_0 = arith.constant 0 : i32
    return %arg0, %c0_i32 : i32, i32
  }
  func.func @transform_2(%arg0: i32) -> (i32, i32) {
    %c0_i32 = arith.constant 0 : i32
    %c0_i32_0 = arith.constant 0 : i32
    return %arg0, %c0_i32 : i32, i32
  }
}

</mosaic_0001>

<bundles_post_ra>
// kernel: soft_target_loss.1
= control target key start
LH: loop header
LB: loop body
LE: loop exit
PB: predicated region body
PF: predicated region fallthrough
CT: control target
= control target key end

     0   :  { %7 = vsyncpa [#allocation3], 0  ;;  %s188_s0 = inlined_call_operand.hbm [shape: f32[8,32], index: 0, kind: input, shape index: {}]   ;;  %s189_s1 = inlined_call_operand.hbm [shape: f32[8,32], index: 1, kind: input, shape index: {}]   ;;  %s190_s2 = inlined_call_operand.vmem [shape: f32[8,1], index: 2, kind: output, shape index: {}]  }
   0x1   :  { %8 = vsyncpa [#allocation5], 0  ;;  %s139_s9 = smov [#allocation2]   ;;  %s140_s11 = smov [#allocation4]  }
   0x2   :  { %s15_s10 = sshll.u32 %s139_s9, 4  ;;  %s25_s12 = sshll.u32 %s140_s11, 4  ;;  %s16_s10 = int_to_ptr.vmem [resolvable:$true] %s15_s10  ;;  %s26_s12 = int_to_ptr.vmem [resolvable:$true] %s25_s12 }
   0x3   :  { %s91_s15 = scalar_lea.hbm %s188_s0, 128 }
   0x4   :  { %p92_p0 = scmp.ne.s32.totalorder %s188_s0, %s91_s15  ;;  %p95_p1 = scmp.lt.u32.totalorder %s91_s15, %s188_s0 }
   0x6   :  { %p97_p2 = pnand %p95_p1, %p92_p0 }
   0x8   :  { %100 = shalt.err (!%p97_p2)
}
   0x9   :  { %s101_s20 = scalar_lea.vmem %s16_s10, 128  ;;  %p106_p4 = scmp.lt.s32.totalorder %s16_s10, %s16_s10 }
   0xa   :  { %p102_p3 = scmp.ne.s32.totalorder %s16_s10, %s101_s20  ;;  %p107_p5 = scmp.lt.s32.totalorder %s101_s20, %s101_s20 }
   0xc   :  { %p108_p6 = por %p107_p5, %p106_p4 }
   0xe   :  { %p109_p7 = pnand %p108_p6, %p102_p3 }
  0x10   :  { %112 = shalt.err (!%p109_p7)
}
  0x11   :  { %18 = dma.hbm_to_vmem [thread:$0]  %s188_s0, 128, %s16_s10, [#allocation3]  }
  0x12   :  { %s113_s25 = scalar_lea.hbm %s189_s1, 128 }
  0x13   :  { %p114_p8 = scmp.ne.s32.totalorder %s189_s1, %s113_s25  ;;  %p117_p9 = scmp.lt.u32.totalorder %s113_s25, %s189_s1 }
  0x15   :  { %p119_p10 = pnand %p117_p9, %p114_p8 }
  0x17   :  { %122 = shalt.err (!%p119_p10)
}
  0x18   :  { %s123_s30 = scalar_lea.vmem %s26_s12, 128  ;;  %p128_p12 = scmp.lt.s32.totalorder %s26_s12, %s26_s12 }
  0x19   :  { %p124_p11 = scmp.ne.s32.totalorder %s26_s12, %s123_s30  ;;  %p129_p13 = scmp.lt.s32.totalorder %s123_s30, %s123_s30 }
  0x1b   :  { %p130_p0 = por %p129_p13, %p128_p12 }
  0x1d   :  { %p131_p1 = pnand %p130_p0, %p124_p11 }
  0x1f   :  { %134 = shalt.err (!%p131_p1)
}
  0x20   :  { %28 = dma.hbm_to_vmem [thread:$0]  %s189_s1, 128, %s26_s12, [#allocation5]  }
  0x21   :  { %135 = dma.done.wait [#allocation3], 128  }
  0x22   :  { %136 = vsyncadd [#allocation3], 4294967168 }
  0x23   :  { %137 = dma.done.wait [#allocation5], 128  }
  0x24   :  { %138 = vsyncadd [#allocation5], 4294967168  ;;  %v37_v0 = vld [vmem:[#allocation4] sm:$0xff]  ;;  %vm39_vm0 = vcmask 261120   ;;  %v35_v1 = vld [vmem:[#allocation2] sm:$0xff]  ;;  %vm71_vm1 = vcmask 7168  }
  0x25   :  { %v38_v2 = vmul.f32 0.5, %v37_v0  ;;  %v36_v3 = vmul.f32 0.5, %v35_v1 }
  0x27   :  { %v51_v4 = vsel %vm39_vm0, %v38_v2, -inf  ;;  %v40_v5 = vsel %vm39_vm0, %v36_v3, -inf }
  0x28   :  { %52 = vmax.xlane.f32.xlu0 %v51_v4 }
  0x2c   :  { %41 = vmax.xlane.f32.xlu0 %v40_v5 }
  0xb5   :  { %v53_v6 = vpop.xlane.xlu0 %52 }
  0xb6   :  { %v54_v7 = vsub.f32 %v38_v2, %v53_v6 }
  0xb8   :  { %v55_v8 = vmul.f32 1.442695, %v54_v7 }
  0xb9   :  { %v42_v9 = vpop.xlane.xlu0 %41 }
  0xba   :  { %81 = vpow2.f32 %v55_v8  ;;  %v43_v10 = vsub.f32 %v36_v3, %v42_v9 }
  0xbc   :  { %v44_v11 = vmul.f32 1.442695, %v43_v10  ;;  %v60_v12 = vsub.f32 %v54_v7, %v43_v10 }
  0xbe   :  { %83 = vpow2.f32 %v44_v11 }
  0xc4   :  { %v82_v13 = vpop.eup %81 }
  0xc5   :  { %v57_v14 = vsel %vm39_vm0, %v82_v13, 0.0  ;;  %v61_v15 = vmul.f32 %v82_v13, %v60_v12 }
  0xc6   :  { %58 = vadd.xlane.f32.xlu1 %v57_v14 }
  0xc7   :  { %v62_v16 = vsel %vm39_vm0, %v61_v15, 0.0 }
  0xc8   :  { %v84_v17 = vpop.eup %83  ;;  %63 = vadd.xlane.f32.xlu0 %v62_v16 }
  0xc9   :  { %v46_v18 = vsel %vm39_vm0, %v84_v17, 0.0 }
  0xca   :  { %47 = vadd.xlane.f32.xlu1 %v46_v18 }
 0x153   :  { %v59_v19 = vpop.xlane.xlu1 %58 }
 0x154   :  { %85 = vrcp.f32 %v59_v19 }
 0x155   :  { %87 = vlog2.f32 %v59_v19  ;;  %v64_v22 = vpop.xlane.xlu0 %63 }
 0x157   :  { %v48_v20 = vpop.xlane.xlu1 %47 }
 0x158   :  { %89 = vlog2.f32 %v48_v20 }
 0x15e   :  { %v86_v21 = vpop.eup %85 }
 0x15f   :  { %v88_v23 = vpop.eup %87  ;;  %v66_v24 = vmul.f32 %v86_v21, %v64_v22 }
 0x160   :  { %v68_v25 = vmul.f32 0.6931472, %v88_v23 }
 0x162   :  { %v90_v26 = vpop.eup %89  ;;  %v69_v27 = vsub.f32 %v66_v24, %v68_v25 }
 0x163   :  { %v50_v28 = vmul.f32 0.6931472, %v90_v26 }
 0x165   :  { %v70_v29 = vadd.f32 %v69_v27, %v50_v28 }
 0x167   :  { %72 = vst.msk [vmem:[%s190_s2] sm:$0xff] %vm71_vm1, %v70_v29 }
 0x168   :  { %77 = vsyncpa [#allocation3], 1 }
 0x169   :  { %78 = vsyncpa [#allocation5], 1 }

</bundles_post_ra>
